<compile_context>
chip_gen: v7x
topology: tpu7x:2x2x1
jax: 0.10.0
libtpu: 0.0.40
codegen_flags: <defaults>
</compile_context>

<pallas_src>
import numpy as np
import jax
import jax.numpy as jnp
from jax import lax
from jax.experimental import pallas as pl
from jax.experimental.pallas import tpu as pltpu

EPS = 1e-5  # torch InstanceNorm1d default


def _inorm_lastdim(v):
    # InstanceNorm (affine=False, biased variance) over the last axis.
    m = jnp.mean(v, axis=-1, keepdims=True)
    var = jnp.mean((v - m) ** 2, axis=-1, keepdims=True)
    return (v - m) * lax.rsqrt(var + EPS)


def dgru_kernel(x_ref, fw_ref,
                fc_hid_w_ref, fc_hid_b_ref,
                w_ih_ref, b_ihz_ref,
                w_hh_ref, b_hhn_ref,
                fc_out_w_ref, fc_out_b_ref,
                out_ref,
                gx_ref, rnn_ref):
    # layout: x_ref: (2, B, C, L) stacked [real | imag] channels-major planes;
    #         fw_ref: (2, 1, C, L) filter weights (broadcast over B inside kernel);
    #         out_ref: (B, OUT_PAD) lane-dense, first 2C lanes = [j=0 block | j=1 block].
    _, B, C, L = x_ref.shape
    H4 = rnn_ref.shape[1]     # GRU hidden = 4 * hidden_size
    H12 = gx_ref.shape[1]     # 3 gates * 4H
    H8 = 2 * H4

    # ---- pre-phase: InstanceNorm + per-channel filter over stacked real/imag. ----
    x_n = _inorm_lastdim(x_ref[...])                               # (2, B, C, L)
    f = jnp.tanh(jnp.sum(x_n * fw_ref[...], axis=-1))              # (2, B, C)
    fr = f[0]                                                      # (B, C)
    fi = f[1]                                                      # (B, C)

    amp2 = fr * fr + fi * fi                                       # raw amp^2
    amp = jnp.sqrt(amp2)                                           # raw amp
    # amp1/amp2 learnable scalars are already folded into fc_hid_w rows (wrapper).
    feat = jnp.concatenate(
        [amp2 * fr, amp2 * fi, amp * fr, amp * fi, fr, fi], axis=-1)   # (B, 6C)
    hid = (jnp.dot(feat, fc_hid_w_ref[...],
                   preferred_element_type=jnp.float32)
           + fc_hid_b_ref[...])                                    # (B, 2H)

    # GRU input-side gate pre-activations for all "time" steps (the B axis).
    # b_ihz already contains b_ih + [b_hh_r | b_hh_z | 0] (r/z recurrent biases
    # folded outside the serial loop).
    gx_ref[...] = (jnp.dot(hid.astype(jnp.bfloat16), w_ih_ref[...],
                           preferred_element_type=jnp.float32)
                   + b_ihz_ref[...])                               # (B, 12H) order [r|z|n]

    # Hoisted out of the serial loop: single VMEM load of the recurrent weight and
    # the n-gate recurrent bias.
    w_hh = w_hh_ref[...]                                           # (4H, 12H) bf16
    b_hh_n = b_hhn_ref[...]                                        # (1, 4H)

    def step(t, h):
        # h lives in vregs (loop carry): no VMEM round trip on the serial path.
        gx = gx_ref[pl.ds(t, 1), :]                                # (1, 12H)
        gh = jnp.dot(h.astype(jnp.bfloat16), w_hh,
                     preferred_element_type=jnp.float32)           # (1, 12H), no bias
        # sigmoid(x) = 0.5*tanh(0.5*x) + 0.5 : one fused add + one EUP push for r and z.
        rz = 0.5 * jnp.tanh(0.5 * (gx[:, 0:H8] + gh[:, 0:H8])) + 0.5
        r = rz[:, 0:H4]
        z = rz[:, H4:H8]
        n = jnp.tanh(gx[:, H8:H12] + r * (gh[:, H8:H12] + b_hh_n))
        h_new = n + z * (h - n)                                    # == (1-z)*n + z*h
        # TODO(synk): accumulate 8 steps in an (8, 4H) carry and store one aligned
        # sublane tile instead of a per-step masked row store (off the dep chain).
        rnn_ref[pl.ds(t, 1), :] = h_new
        return h_new

    h0 = jnp.zeros((1, H4), jnp.float32)        # GRU always starts from zeros
    lax.fori_loop(0, B, step, h0, unroll=(B if B <= 8 else 4))

    # fc_out (rows pre-permuted + zero-padded to OUT_PAD lanes in the wrapper),
    # followed by InstanceNorm1d(2): per-half statistics via lane masks so the final
    # store is a full-width unmasked vst.
    y = (jnp.dot(rnn_ref[...], fc_out_w_ref[...],
                 preferred_element_type=jnp.float32)
         + fc_out_b_ref[...])                                      # (B, OUT_PAD)
    lane = lax.broadcasted_iota(jnp.int32, y.shape, 1)
    in0 = lane < C
    in1 = jnp.logical_and(lane >= C, lane < 2 * C)
    inv_c = 1.0 / C
    m0 = jnp.sum(jnp.where(in0, y, 0.0), axis=-1, keepdims=True) * inv_c
    m1 = jnp.sum(jnp.where(in1, y, 0.0), axis=-1, keepdims=True) * inv_c
    v0 = jnp.sum(jnp.where(in0, (y - m0) ** 2, 0.0), axis=-1, keepdims=True) * inv_c
    v1 = jnp.sum(jnp.where(in1, (y - m1) ** 2, 0.0), axis=-1, keepdims=True) * inv_c
    mean_sel = jnp.where(in0, m0, m1)
    inv_sel = jnp.where(in0, lax.rsqrt(v0 + EPS), lax.rsqrt(v1 + EPS))
    out_ref[...] = (y - mean_sel) * inv_sel                        # padded lanes = junk, sliced off outside


def dgru_forward(x, h_0, params):
    # layout: x: (B, L, C, 2) like the PyTorch module.  h_0 is accepted for interface
    # parity but, exactly as in the PyTorch forward, the GRU is started from zeros.
    del h_0
    B, L, C, _ = x.shape
    H = params["hidden_size"]
    H4, H8, H12 = 4 * H, 8 * H, 12 * H

    # (2, B, C, L) stacked real/imag planes, channels-major so the filter reduction
    # runs over the lane axis.
    x_ri = jnp.stack([jnp.transpose(x[..., 0], (0, 2, 1)),
                      jnp.transpose(x[..., 1], (0, 2, 1))], axis=0).astype(jnp.float32)
    # Filter weights passed ONCE (no B-fold broadcast through HBM).
    fw = jnp.stack([params["filt_W_real"], params["filt_W_imag"]],
                   axis=0)[:, None].astype(jnp.float32)            # (2, 1, C, L)

    # Fold the amp1/amp2 learnable scalars into fc_hid weight rows:
    # rows [0,2C) scale by amp2_weight, rows [2C,4C) by amp1_weight, rest by 1.
    row_scale = jnp.concatenate([
        jnp.full((2 * C,), params["amp2"], jnp.float32),
        jnp.full((2 * C,), params["amp1"], jnp.float32),
        jnp.ones((2 * C,), jnp.float32)])
    fc_hid_wT = params["fc_hid_W"].T * row_scale[:, None]          # (6C, 2H)  f32
    fc_hid_b = params["fc_hid_b"][None, :]                         # (1, 2H)

    # GRU weights as bf16 MXU operands (f32 accumulation inside the kernel).
    w_ih_T = params["W_ih"].T.astype(jnp.bfloat16)                 # (2H, 12H)
    w_hh_T = params["W_hh"].T.astype(jnp.bfloat16)                 # (4H, 12H)

    # Fold the r/z thirds of b_hh into the precomputed input gates; only the n-gate
    # recurrent bias must stay inside the loop (it is multiplied by r).
    b_ihz = (params["b_ih"]
             + jnp.concatenate([params["b_hh"][:H8],
                                jnp.zeros((H4,), jnp.float32)]))[None, :]  # (1, 12H)
    b_hh_n = params["b_hh"][H8:H12][None, :]                       # (1, 4H)

    # Re-order fc_out rows from interleaved (c, j) -> blocked (j, c) and zero-pad the
    # output width to a lane-dense multiple of 128 so the final store is unmasked.
    OUT_PAD = ((2 * C + 127) // 128) * 128
    Wp = params["fc_out_W"].reshape(C, 2, H4).transpose(1, 0, 2).reshape(2 * C, H4)
    bp = params["fc_out_b"].reshape(C, 2).transpose(1, 0).reshape(2 * C)
    fc_out_wT = jnp.zeros((H4, OUT_PAD), jnp.float32).at[:, :2 * C].set(Wp.T)
    fc_out_b = jnp.zeros((1, OUT_PAD), jnp.float32).at[:, :2 * C].set(bp[None, :])

    # NOTE: grid-less kernel runs on a single TensorCore; for several independent
    # DGRU instances, add a leading "parallel" grid axis (also batches the M=1
    # recurrent matmul).  For production-sized inputs on v7x (64 MiB VMEM), tile the
    # pre-phase over B instead of keeping x_ri fully resident.
    out_pad = pl.pallas_call(
        dgru_kernel,
        out_shape=jax.ShapeDtypeStruct((B, OUT_PAD), jnp.float32),
        scratch_shapes=[
            pltpu.VMEM((B, H12), jnp.float32),     # precomputed input gates
            pltpu.VMEM((B, H4), jnp.float32),      # GRU outputs
        ],
        compiler_params=pltpu.CompilerParams(vmem_limit_bytes=32 * 1024 * 1024),
    )(x_ri, fw, fc_hid_wT, fc_hid_b, w_ih_T, b_ihz, w_hh_T, b_hh_n,
      fc_out_wT, fc_out_b)

    # (B, 2C) blocked as [j=0 | j=1] -> (B, C, 2), matching the PyTorch output.
    out2d = out_pad[:, :2 * C]
    return jnp.transpose(out2d.reshape(B, 2, C), (0, 2, 1))


def init_params(key, hidden_size, output_size, n_channels, input_len):
    H = hidden_size
    ks = jax.random.split(key, 10)

    def u(k, shape, scale):
        return jax.random.uniform(k, shape, jnp.float32, -scale, scale)

    return dict(
        hidden_size=H,
        filt_W_real=u(ks[0], (n_channels, input_len), 1.0 / np.sqrt(input_len)),
        filt_W_imag=u(ks[1], (n_channels, input_len), 1.0 / np.sqrt(input_len)),
        fc_hid_W=u(ks[2], (2 * H, 6 * n_channels), 1.0 / np.sqrt(6 * n_channels)),
        fc_hid_b=u(ks[3], (2 * H,), 1.0 / np.sqrt(6 * n_channels)),
        W_ih=u(ks[4], (12 * H, 2 * H), 1.0 / np.sqrt(4 * H)),    # GRU gate order [r;z;n]
        W_hh=u(ks[5], (12 * H, 4 * H), 1.0 / np.sqrt(4 * H)),
        b_ih=u(ks[6], (12 * H,), 1.0 / np.sqrt(4 * H)),
        b_hh=u(ks[7], (12 * H,), 1.0 / np.sqrt(4 * H)),
        fc_out_W=u(ks[8], (output_size * n_channels, 4 * H), 1.0 / np.sqrt(4 * H)),
        fc_out_b=u(ks[9], (output_size * n_channels,), 1.0 / np.sqrt(4 * H)),
        amp1=jnp.asarray(0.001, jnp.float32),
        amp2=jnp.asarray(0.001, jnp.float32),
    )


def dgru_reference(x, params):
    # Pure-JAX (f32) mirror of the PyTorch forward, used only to check the kernel.
    H = params["hidden_size"]
    B, L, C, _ = x.shape
    H4 = 4 * H

    def inorm(v, axis):
        m = v.mean(axis=axis, keepdims=True)
        var = ((v - m) ** 2).mean(axis=axis, keepdims=True)
        return (v - m) / jnp.sqrt(var + EPS)

    xr = inorm(x[..., 0], axis=1)   # InstanceNorm over L per (b, c)
    xi = inorm(x[..., 1], axis=1)
    fr = jnp.tanh(jnp.einsum("blc,cl->bc", xr, params["filt_W_real"]))
    fi = jnp.tanh(jnp.einsum("blc,cl->bc", xi, params["filt_W_imag"]))
    amp2 = fr ** 2 + fi ** 2
    amp = jnp.sqrt(amp2)
    a1 = params["amp1"] * amp
    a2 = params["amp2"] * amp2
    feat = jnp.concatenate([a2 * fr, a2 * fi, a1 * fr, a1 * fi, fr, fi], axis=-1)
    hid = feat @ params["fc_hid_W"].T + params["fc_hid_b"]
    h = jnp.zeros((H4,), jnp.float32)
    outs = []
    for t in range(B):
        gx = params["W_ih"] @ hid[t] + params["b_ih"]
        gh = params["W_hh"] @ h + params["b_hh"]
        r = jax.nn.sigmoid(gx[:H4] + gh[:H4])
        z = jax.nn.sigmoid(gx[H4:2 * H4] + gh[H4:2 * H4])
        n = jnp.tanh(gx[2 * H4:] + r * gh[2 * H4:])
        h = (1.0 - z) * n + z * h
        outs.append(h)
    rnn_out = jnp.stack(outs)                                   # (B, 4H)
    o = rnn_out @ params["fc_out_W"].T + params["fc_out_b"]     # (B, 2C)
    o = o.reshape(B, C, 2).transpose(0, 2, 1)                   # (B, 2, C)
    o = inorm(o, axis=-1)                                       # InstanceNorm1d(2)
    return o.transpose(0, 2, 1)                                 # (B, C, 2)


if __name__ == "__main__":
    B, L, C = 2, 16, 4            # batch, input_len (seq), n_channels
    hidden_size, output_size = 32, 2

    key = jax.random.PRNGKey(0)
    kx, kp = jax.random.split(key)
    x = jax.random.normal(kx, (B, L, C, 2), jnp.float32)
    h_0 = jnp.zeros((1, 1, hidden_size * 4), jnp.float32)  # ignored, as in the PyTorch code
    params = init_params(kp, hidden_size, output_size, C, L)

    out = jax.block_until_ready(dgru_forward(x, h_0, params))
    ref = jax.block_until_ready(dgru_reference(x, params))

    assert out.shape == (B, C, 2)
    # Tolerance covers the bf16 GRU matmul operands (f32 accumulation); all other
    # math is f32.
    np.testing.assert_allclose(np.asarray(out), np.asarray(ref), rtol=2e-2, atol=2e-2)
    print("KERNEL_OK")
</pallas_src>

<mosaic_0001>
module attributes {stable_mosaic.version = 11 : i64} {
  func.func @dgru_kernel(%arg0: memref<2x2x4x16xf32, #tpu.memory_space<vmem>>, %arg1: memref<2x1x4x16xf32, #tpu.memory_space<vmem>>, %arg2: memref<24x64xf32, #tpu.memory_space<vmem>>, %arg3: memref<1x64xf32, #tpu.memory_space<vmem>>, %arg4: memref<64x384xbf16, #tpu.memory_space<vmem>>, %arg5: memref<1x384xf32, #tpu.memory_space<vmem>>, %arg6: memref<128x384xbf16, #tpu.memory_space<vmem>>, %arg7: memref<1x128xf32, #tpu.memory_space<vmem>>, %arg8: memref<128x128xf32, #tpu.memory_space<vmem>>, %arg9: memref<1x128xf32, #tpu.memory_space<vmem>>, %arg10: memref<2x128xf32, #tpu.memory_space<vmem>>, %arg11: memref<2x384xf32, #tpu.memory_space<vmem>>, %arg12: memref<2x128xf32, #tpu.memory_space<vmem>>) attributes {dimension_semantics = [], scalar_prefetch = 0 : i64, scratch_operands = 2 : i64, tpu.core_type = #tpu.core_type<tc>} {
    %c0 = arith.constant 0 : index
    %c0_0 = arith.constant 0 : index
    %c0_1 = arith.constant 0 : index
    %c0_2 = arith.constant 0 : index
    %0 = vector.load %arg0[%c0, %c0_0, %c0_1, %c0_2] : memref<2x2x4x16xf32, #tpu.memory_space<vmem>>, vector<2x2x4x16xf32>
    %cst = arith.constant dense<0.000000e+00> : vector<2x2x4xf32>
    %1 = vector.multi_reduction <add>, %0, %cst [3] : vector<2x2x4x16xf32> to vector<2x2x4xf32>
    %2 = vector.shape_cast %1 : vector<2x2x4xf32> to vector<2x2x4x1xf32>
    %cst_3 = arith.constant 1.600000e+01 : f32
    %3 = vector.broadcast %cst_3 : f32 to vector<2x2x4x1xf32>
    %4 = arith.divf %2, %3 : vector<2x2x4x1xf32>
    %5 = vector.broadcast %4 : vector<2x2x4x1xf32> to vector<2x2x4x16xf32>
    %6 = arith.subf %0, %5 : vector<2x2x4x16xf32>
    %7 = arith.mulf %6, %6 : vector<2x2x4x16xf32>
    %cst_4 = arith.constant dense<0.000000e+00> : vector<2x2x4xf32>
    %8 = vector.multi_reduction <add>, %7, %cst_4 [3] : vector<2x2x4x16xf32> to vector<2x2x4xf32>
    %9 = vector.shape_cast %8 : vector<2x2x4xf32> to vector<2x2x4x1xf32>
    %cst_5 = arith.constant 1.600000e+01 : f32
    %10 = vector.broadcast %cst_5 : f32 to vector<2x2x4x1xf32>
    %11 = arith.divf %9, %10 : vector<2x2x4x1xf32>
    %12 = vector.broadcast %4 : vector<2x2x4x1xf32> to vector<2x2x4x16xf32>
    %13 = arith.subf %0, %12 : vector<2x2x4x16xf32>
    %cst_6 = arith.constant 9.99999974E-6 : f32
    %14 = vector.broadcast %cst_6 : f32 to vector<2x2x4x1xf32>
    %15 = arith.addf %11, %14 : vector<2x2x4x1xf32>
    %16 = math.rsqrt %15 : vector<2x2x4x1xf32>
    %17 = vector.broadcast %16 : vector<2x2x4x1xf32> to vector<2x2x4x16xf32>
    %18 = arith.mulf %13, %17 : vector<2x2x4x16xf32>
    %c0_7 = arith.constant 0 : index
    %c0_8 = arith.constant 0 : index
    %c0_9 = arith.constant 0 : index
    %c0_10 = arith.constant 0 : index
    %19 = vector.load %arg1[%c0_7, %c0_8, %c0_9, %c0_10] : memref<2x1x4x16xf32, #tpu.memory_space<vmem>>, vector<2x1x4x16xf32>
    %20 = vector.broadcast %19 : vector<2x1x4x16xf32> to vector<2x2x4x16xf32>
    %21 = arith.mulf %18, %20 : vector<2x2x4x16xf32>
    %cst_11 = arith.constant dense<0.000000e+00> : vector<2x2x4xf32>
    %22 = vector.multi_reduction <add>, %21, %cst_11 [3] : vector<2x2x4x16xf32> to vector<2x2x4xf32>
    %23 = math.tanh %22 : vector<2x2x4xf32>
    %24 = vector.extract_strided_slice %23 {offsets = [0, 0, 0], sizes = [1, 2, 4], strides = [1, 1, 1]} : vector<2x2x4xf32> to vector<1x2x4xf32>
    %25 = vector.shape_cast %24 : vector<1x2x4xf32> to vector<2x4xf32>
    %26 = vector.extract_strided_slice %23 {offsets = [1, 0, 0], sizes = [1, 2, 4], strides = [1, 1, 1]} : vector<2x2x4xf32> to vector<1x2x4xf32>
    %27 = vector.shape_cast %26 : vector<1x2x4xf32> to vector<2x4xf32>
    %28 = arith.mulf %25, %25 : vector<2x4xf32>
    %29 = arith.mulf %27, %27 : vector<2x4xf32>
    %30 = arith.addf %28, %29 : vector<2x4xf32>
    %31 = math.sqrt %30 : vector<2x4xf32>
    %32 = arith.mulf %30, %25 : vector<2x4xf32>
    %33 = arith.mulf %30, %27 : vector<2x4xf32>
    %34 = arith.mulf %31, %25 : vector<2x4xf32>
    %35 = arith.mulf %31, %27 : vector<2x4xf32>
    %36 = tpu.concatenate %32, %33, %34, %35, %25, %27 in 1 : vector<2x4xf32>, vector<2x4xf32>, vector<2x4xf32>, vector<2x4xf32>, vector<2x4xf32>, vector<2x4xf32> -> vector<2x24xf32>
    %c0_12 = arith.constant 0 : index
    %c0_13 = arith.constant 0 : index
    %37 = vector.load %arg2[%c0_12, %c0_13] : memref<24x64xf32, #tpu.memory_space<vmem>>, vector<24x64xf32>
    %cst_14 = arith.constant dense<0.000000e+00> : vector<2x64xf32>
    %38 = tpu.matmul %36, %37, %cst_14 {dimension_numbers = #tpu.dot_dimension_numbers<[1], [0], [0], [1], [0, 0, 1, 1], [], []>} : vector<2x24xf32>, vector<24x64xf32>, vector<2x64xf32> -> vector<2x64xf32>
    %c0_15 = arith.constant 0 : index
    %c0_16 = arith.constant 0 : index
    %39 = vector.load %arg3[%c0_15, %c0_16] : memref<1x64xf32, #tpu.memory_space<vmem>>, vector<1x64xf32>
    %40 = vector.broadcast %39 : vector<1x64xf32> to vector<2x64xf32>
    %41 = arith.addf %38, %40 : vector<2x64xf32>
    %42 = arith.truncf %41 : vector<2x64xf32> to vector<2x64xbf16>
    %c0_17 = arith.constant 0 : index
    %c0_18 = arith.constant 0 : index
    %43 = vector.load %arg4[%c0_17, %c0_18] : memref<64x384xbf16, #tpu.memory_space<vmem>>, vector<64x384xbf16>
    %cst_19 = arith.constant dense<0.000000e+00> : vector<2x384xf32>
    %44 = tpu.matmul %42, %43, %cst_19 {dimension_numbers = #tpu.dot_dimension_numbers<[1], [0], [0], [1], [0, 0, 1, 1], [], []>} : vector<2x64xbf16>, vector<64x384xbf16>, vector<2x384xf32> -> vector<2x384xf32>
    %c0_20 = arith.constant 0 : index
    %c0_21 = arith.constant 0 : index
    %45 = vector.load %arg5[%c0_20, %c0_21] : memref<1x384xf32, #tpu.memory_space<vmem>>, vector<1x384xf32>
    %46 = vector.broadcast %45 : vector<1x384xf32> to vector<2x384xf32>
    %47 = arith.addf %44, %46 : vector<2x384xf32>
    %c0_22 = arith.constant 0 : index
    %c0_23 = arith.constant 0 : index
    %48 = vector.load %arg11[%c0_22, %c0_23] : memref<2x384xf32, #tpu.memory_space<vmem>>, vector<2x384xf32>
    tpu.vector_store %arg11[%c0_22, %c0_23], %47 {strides = array<i32>} : memref<2x384xf32, #tpu.memory_space<vmem>>, vector<2x384xf32>,
    %c0_24 = arith.constant 0 : index
    %c0_25 = arith.constant 0 : index
    %49 = vector.load %arg6[%c0_24, %c0_25] : memref<128x384xbf16, #tpu.memory_space<vmem>>, vector<128x384xbf16>
    %c0_26 = arith.constant 0 : index
    %c0_27 = arith.constant 0 : index
    %50 = vector.load %arg7[%c0_26, %c0_27] : memref<1x128xf32, #tpu.memory_space<vmem>>, vector<1x128xf32>
    %cst_28 = arith.constant 0.000000e+00 : f32
    %51 = vector.broadcast %cst_28 : f32 to vector<1x128xf32>
    %c0_i32 = arith.constant 0 : i32
    %52 = arith.index_cast %c0_i32 : i32 to index
    %c0_29 = arith.constant 0 : index
    %53 = vector.load %arg11[%52, %c0_29] : memref<2x384xf32, #tpu.memory_space<vmem>>, vector<1x384xf32>
    %54 = arith.truncf %51 : vector<1x128xf32> to vector<1x128xbf16>
    %cst_30 = arith.constant dense<0.000000e+00> : vector<1x384xf32>
    %55 = tpu.matmul %54, %49, %cst_30 {dimension_numbers = #tpu.dot_dimension_numbers<[1], [0], [0], [1], [0, 0, 1, 1], [], []>} : vector<1x128xbf16>, vector<128x384xbf16>, vector<1x384xf32> -> vector<1x384xf32>
    %56 = vector.extract_strided_slice %53 {offsets = [0, 0], sizes = [1, 256], strides = [1, 1]} : vector<1x384xf32> to vector<1x256xf32>
    %57 = vector.extract_strided_slice %55 {offsets = [0, 0], sizes = [1, 256], strides = [1, 1]} : vector<1x384xf32> to vector<1x256xf32>
    %58 = arith.addf %56, %57 : vector<1x256xf32>
    %cst_31 = arith.constant 5.000000e-01 : f32
    %59 = vector.broadcast %cst_31 : f32 to vector<1x256xf32>
    %60 = arith.mulf %59, %58 : vector<1x256xf32>
    %61 = math.tanh %60 : vector<1x256xf32>
    %cst_32 = arith.constant 5.000000e-01 : f32
    %62 = vector.broadcast %cst_32 : f32 to vector<1x256xf32>
    %63 = arith.mulf %62, %61 : vector<1x256xf32>
    %cst_33 = arith.constant 5.000000e-01 : f32
    %64 = vector.broadcast %cst_33 : f32 to vector<1x256xf32>
    %65 = arith.addf %63, %64 : vector<1x256xf32>
    %66 = vector.extract_strided_slice %65 {offsets = [0, 0], sizes = [1, 128], strides = [1, 1]} : vector<1x256xf32> to vector<1x128xf32>
    %67 = vector.extract_strided_slice %65 {offsets = [0, 128], sizes = [1, 128], strides = [1, 1]} : vector<1x256xf32> to vector<1x128xf32>
    %68 = vector.extract_strided_slice %53 {offsets = [0, 256], sizes = [1, 128], strides = [1, 1]} : vector<1x384xf32> to vector<1x128xf32>
    %69 = vector.extract_strided_slice %55 {offsets = [0, 256], sizes = [1, 128], strides = [1, 1]} : vector<1x384xf32> to vector<1x128xf32>
    %70 = arith.addf %69, %50 : vector<1x128xf32>
    %71 = arith.mulf %66, %70 : vector<1x128xf32>
    %72 = arith.addf %68, %71 : vector<1x128xf32>
    %73 = math.tanh %72 : vector<1x128xf32>
    %74 = arith.subf %51, %73 : vector<1x128xf32>
    %75 = arith.mulf %67, %74 : vector<1x128xf32>
    %76 = arith.addf %73, %75 : vector<1x128xf32>
    %77 = arith.index_cast %c0_i32 : i32 to index
    %c0_34 = arith.constant 0 : index
    %78 = vector.load %arg12[%77, %c0_34] : memref<2x128xf32, #tpu.memory_space<vmem>>, vector<1x128xf32>
    tpu.vector_store %arg12[%77, %c0_34], %76 {strides = array<i32>} : memref<2x128xf32, #tpu.memory_space<vmem>>, vector<1x128xf32>,
    %c1_i32 = arith.constant 1 : i32
    %79 = arith.index_cast %c1_i32 : i32 to index
    %c0_35 = arith.constant 0 : index
    %80 = vector.load %arg11[%79, %c0_35] : memref<2x384xf32, #tpu.memory_space<vmem>>, vector<1x384xf32>
    %81 = arith.truncf %76 : vector<1x128xf32> to vector<1x128xbf16>
    %cst_36 = arith.constant dense<0.000000e+00> : vector<1x384xf32>
    %82 = tpu.matmul %81, %49, %cst_36 {dimension_numbers = #tpu.dot_dimension_numbers<[1], [0], [0], [1], [0, 0, 1, 1], [], []>} : vector<1x128xbf16>, vector<128x384xbf16>, vector<1x384xf32> -> vector<1x384xf32>
    %83 = vector.extract_strided_slice %80 {offsets = [0, 0], sizes = [1, 256], strides = [1, 1]} : vector<1x384xf32> to vector<1x256xf32>
    %84 = vector.extract_strided_slice %82 {offsets = [0, 0], sizes = [1, 256], strides = [1, 1]} : vector<1x384xf32> to vector<1x256xf32>
    %85 = arith.addf %83, %84 : vector<1x256xf32>
    %cst_37 = arith.constant 5.000000e-01 : f32
    %86 = vector.broadcast %cst_37 : f32 to vector<1x256xf32>
    %87 = arith.mulf %86, %85 : vector<1x256xf32>
    %88 = math.tanh %87 : vector<1x256xf32>
    %cst_38 = arith.constant 5.000000e-01 : f32
    %89 = vector.broadcast %cst_38 : f32 to vector<1x256xf32>
    %90 = arith.mulf %89, %88 : vector<1x256xf32>
    %cst_39 = arith.constant 5.000000e-01 : f32
    %91 = vector.broadcast %cst_39 : f32 to vector<1x256xf32>
    %92 = arith.addf %90, %91 : vector<1x256xf32>
    %93 = vector.extract_strided_slice %92 {offsets = [0, 0], sizes = [1, 128], strides = [1, 1]} : vector<1x256xf32> to vector<1x128xf32>
    %94 = vector.extract_strided_slice %92 {offsets = [0, 128], sizes = [1, 128], strides = [1, 1]} : vector<1x256xf32> to vector<1x128xf32>
    %95 = vector.extract_strided_slice %80 {offsets = [0, 256], sizes = [1, 128], strides = [1, 1]} : vector<1x384xf32> to vector<1x128xf32>
    %96 = vector.extract_strided_slice %82 {offsets = [0, 256], sizes = [1, 128], strides = [1, 1]} : vector<1x384xf32> to vector<1x128xf32>
    %97 = arith.addf %96, %50 : vector<1x128xf32>
    %98 = arith.mulf %93, %97 : vector<1x128xf32>
    %99 = arith.addf %95, %98 : vector<1x128xf32>
    %100 = math.tanh %99 : vector<1x128xf32>
    %101 = arith.subf %76, %100 : vector<1x128xf32>
    %102 = arith.mulf %94, %101 : vector<1x128xf32>
    %103 = arith.addf %100, %102 : vector<1x128xf32>
    %104 = arith.index_cast %c1_i32 : i32 to index
    %c0_40 = arith.constant 0 : index
    %105 = vector.load %arg12[%104, %c0_40] : memref<2x128xf32, #tpu.memory_space<vmem>>, vector<1x128xf32>
    tpu.vector_store %arg12[%104, %c0_40], %103 {strides = array<i32>} : memref<2x128xf32, #tpu.memory_space<vmem>>, vector<1x128xf32>,
    %c2_i32 = arith.constant 2 : i32
    %c0_41 = arith.constant 0 : index
    %c0_42 = arith.constant 0 : index
    %106 = vector.load %arg12[%c0_41, %c0_42] : memref<2x128xf32, #tpu.memory_space<vmem>>, vector<2x128xf32>
    %c0_43 = arith.constant 0 : index
    %c0_44 = arith.constant 0 : index
    %107 = vector.load %arg8[%c0_43, %c0_44] : memref<128x128xf32, #tpu.memory_space<vmem>>, vector<128x128xf32>
    %cst_45 = arith.constant dense<0.000000e+00> : vector<2x128xf32>
    %108 = tpu.matmul %106, %107, %cst_45 {dimension_numbers = #tpu.dot_dimension_numbers<[1], [0], [0], [1], [0, 0, 1, 1], [], []>} : vector<2x128xf32>, vector<128x128xf32>, vector<2x128xf32> -> vector<2x128xf32>
    %c0_46 = arith.constant 0 : index
    %c0_47 = arith.constant 0 : index
    %109 = vector.load %arg9[%c0_46, %c0_47] : memref<1x128xf32, #tpu.memory_space<vmem>>, vector<1x128xf32>
    %110 = vector.broadcast %109 : vector<1x128xf32> to vector<2x128xf32>
    %111 = arith.addf %108, %110 : vector<2x128xf32>
    %112 = tpu.iota {dimensions = array<i32: 1>} : vector<2x128xi32>
    %c4_i32 = arith.constant 4 : i32
    %113 = vector.broadcast %c4_i32 : i32 to vector<2x128xi32>
    %114 = arith.cmpi slt, %112, %113 : vector<2x128xi32>
    %c4_i32_48 = arith.constant 4 : i32
    %115 = vector.broadcast %c4_i32_48 : i32 to vector<2x128xi32>
    %116 = arith.cmpi sge, %112, %115 : vector<2x128xi32>
    %c8_i32 = arith.constant 8 : i32
    %117 = vector.broadcast %c8_i32 : i32 to vector<2x128xi32>
    %118 = arith.cmpi slt, %112, %117 : vector<2x128xi32>
    %119 = arith.andi %116, %118 : vector<2x128xi1>
    %cst_49 = arith.constant 0.000000e+00 : f32
    %120 = vector.broadcast %cst_49 : f32 to vector<2x128xf32>
    %121 = arith.select %114, %111, %120 : vector<2x128xi1>, vector<2x128xf32>
    %cst_50 = arith.constant dense<0.000000e+00> : vector<2xf32>
    %122 = vector.multi_reduction <add>, %121, %cst_50 [1] : vector<2x128xf32> to vector<2xf32>
    %123 = vector.shape_cast %122 : vector<2xf32> to vector<2x1xf32>
    %cst_51 = arith.constant 2.500000e-01 : f32
    %124 = vector.broadcast %cst_51 : f32 to vector<2x1xf32>
    %125 = arith.mulf %123, %124 : vector<2x1xf32>
    %cst_52 = arith.constant 0.000000e+00 : f32
    %126 = vector.broadcast %cst_52 : f32 to vector<2x128xf32>
    %127 = arith.select %119, %111, %126 : vector<2x128xi1>, vector<2x128xf32>
    %cst_53 = arith.constant dense<0.000000e+00> : vector<2xf32>
    %128 = vector.multi_reduction <add>, %127, %cst_53 [1] : vector<2x128xf32> to vector<2xf32>
    %129 = vector.shape_cast %128 : vector<2xf32> to vector<2x1xf32>
    %cst_54 = arith.constant 2.500000e-01 : f32
    %130 = vector.broadcast %cst_54 : f32 to vector<2x1xf32>
    %131 = arith.mulf %129, %130 : vector<2x1xf32>
    %132 = vector.broadcast %125 : vector<2x1xf32> to vector<2x128xf32>
    %133 = arith.subf %111, %132 : vector<2x128xf32>
    %134 = arith.mulf %133, %133 : vector<2x128xf32>
    %cst_55 = arith.constant 0.000000e+00 : f32
    %135 = vector.broadcast %cst_55 : f32 to vector<2x128xf32>
    %136 = arith.select %114, %134, %135 : vector<2x128xi1>, vector<2x128xf32>
    %cst_56 = arith.constant dense<0.000000e+00> : vector<2xf32>
    %137 = vector.multi_reduction <add>, %136, %cst_56 [1] : vector<2x128xf32> to vector<2xf32>
    %138 = vector.shape_cast %137 : vector<2xf32> to vector<2x1xf32>
    %cst_57 = arith.constant 2.500000e-01 : f32
    %139 = vector.broadcast %cst_57 : f32 to vector<2x1xf32>
    %140 = arith.mulf %138, %139 : vector<2x1xf32>
    %141 = vector.broadcast %131 : vector<2x1xf32> to vector<2x128xf32>
    %142 = arith.subf %111, %141 : vector<2x128xf32>
    %143 = arith.mulf %142, %142 : vector<2x128xf32>
    %cst_58 = arith.constant 0.000000e+00 : f32
    %144 = vector.broadcast %cst_58 : f32 to vector<2x128xf32>
    %145 = arith.select %119, %143, %144 : vector<2x128xi1>, vector<2x128xf32>
    %cst_59 = arith.constant dense<0.000000e+00> : vector<2xf32>
    %146 = vector.multi_reduction <add>, %145, %cst_59 [1] : vector<2x128xf32> to vector<2xf32>
    %147 = vector.shape_cast %146 : vector<2xf32> to vector<2x1xf32>
    %cst_60 = arith.constant 2.500000e-01 : f32
    %148 = vector.broadcast %cst_60 : f32 to vector<2x1xf32>
    %149 = arith.mulf %147, %148 : vector<2x1xf32>
    %150 = vector.shape_cast %125 : vector<2x1xf32> to vector<2x1xf32>
    %151 = vector.broadcast %150 : vector<2x1xf32> to vector<2x128xf32>
    %152 = vector.shape_cast %131 : vector<2x1xf32> to vector<2x1xf32>
    %153 = vector.broadcast %152 : vector<2x1xf32> to vector<2x128xf32>
    %154 = arith.select %114, %151, %153 : vector<2x128xi1>, vector<2x128xf32>
    %cst_61 = arith.constant 9.99999974E-6 : f32
    %155 = vector.broadcast %cst_61 : f32 to vector<2x1xf32>
    %156 = arith.addf %140, %155 : vector<2x1xf32>
    %157 = math.rsqrt %156 : vector<2x1xf32>
    %cst_62 = arith.constant 9.99999974E-6 : f32
    %158 = vector.broadcast %cst_62 : f32 to vector<2x1xf32>
    %159 = arith.addf %149, %158 : vector<2x1xf32>
    %160 = math.rsqrt %159 : vector<2x1xf32>
    %161 = vector.shape_cast %157 : vector<2x1xf32> to vector<2x1xf32>
    %162 = vector.broadcast %161 : vector<2x1xf32> to vector<2x128xf32>
    %163 = vector.shape_cast %160 : vector<2x1xf32> to vector<2x1xf32>
    %164 = vector.broadcast %163 : vector<2x1xf32> to vector<2x128xf32>
    %165 = arith.select %114, %162, %164 : vector<2x128xi1>, vector<2x128xf32>
    %166 = arith.subf %111, %154 : vector<2x128xf32>
    %167 = arith.mulf %166, %165 : vector<2x128xf32>
    %c0_63 = arith.constant 0 : index
    %c0_64 = arith.constant 0 : index
    %168 = vector.load %arg10[%c0_63, %c0_64] : memref<2x128xf32, #tpu.memory_space<vmem>>, vector<2x128xf32>
    tpu.vector_store %arg10[%c0_63, %c0_64], %167 {strides = array<i32>} : memref<2x128xf32, #tpu.memory_space<vmem>>, vector<2x128xf32>,
    return
  }
}

</mosaic_0001>

<bundles_post_ra>
// kernel: tpu_custom_call.1
= control target key start
LH: loop header
LB: loop body
LE: loop exit
PB: predicated region body
PF: predicated region fallthrough
CT: control target
= control target key end

     0   :  { %15 = vsyncpa [#allocation5], 0  ;;  %s1993_s0 = inlined_call_operand.hbm [shape: f32[2,2,4,16], index: 0, kind: input, shape index: {}]   ;;  %s1994_s1 = inlined_call_operand.hbm [shape: f32[2,1,4,16], index: 1, kind: input, shape index: {}]   ;;  %s1995_s2 = inlined_call_operand.hbm [shape: f32[24,64], index: 2, kind: input, shape index: {}]   ;;  %s1996_s3 = inlined_call_operand.vmem [shape: f32[1,64], index: 3, kind: input, shape index: {}]   ;;  %s1997_s4 = inlined_call_operand.hbm [shape: bf16[64,384], index: 4, kind: input, shape index: {}]   ;;  %s1998_s5 = inlined_call_operand.vmem [shape: f32[1,384], index: 5, kind: input, shape index: {}]   ;;  %s1999_s6 = inlined_call_operand.hbm [shape: bf16[128,384], index: 6, kind: input, shape index: {}]   ;;  %s2000_s7 = inlined_call_operand.vmem [shape: f32[1,128], index: 7, kind: input, shape index: {}]   ;;  %s2001_s8 = inlined_call_operand.hbm [shape: f32[128,128], index: 8, kind: input, shape index: {}]   ;;  %s2002_s9 = inlined_call_operand.vmem [shape: f32[1,128], index: 9, kind: input, shape index: {}]   ;;  %s2003_s10 = inlined_call_operand.hbm [shape: f32[2,128], index: 10, kind: output, shape index: {}]  }
   0x1   :  { %16 = vsyncpa [#allocation8], 0 }
   0x2   :  { %17 = vsyncpa [#allocation11], 0 }
   0x3   :  { %18 = vsyncpa [#allocation14], 0 }
   0x4   :  { %19 = vsyncpa [#allocation6], 0  ;;  %s1627_s13 = smov [#allocation7]   ;;  %s1628_s15 = smov [#allocation10]  }
   0x5   :  { %s37_s14 = sshll.u32 %s1627_s13, 4  ;;  %s63_s16 = sshll.u32 %s1628_s15, 4  ;;  %s38_s14 = int_to_ptr.vmem [resolvable:$true] %s37_s14  ;;  %s1701_s16 = int_to_ptr.vmem [resolvable:$true] %s63_s16 }
   0x6   :  { %s1463_s19 = scalar_lea.hbm %s1994_s1, 128 }
   0x7   :  { %p1464_p0 = scmp.ne.s32.totalorder %s1994_s1, %s1463_s19  ;;  %p1467_p1 = scmp.lt.u32.totalorder %s1463_s19, %s1994_s1 }
   0x9   :  { %p1469_p2 = pnand %p1467_p1, %p1464_p0 }
   0xb   :  { %1472 = shalt.err (!%p1469_p2)
}
   0xc   :  { %s1473_s24 = scalar_lea.vmem %s38_s14, 128  ;;  %p1478_p4 = scmp.lt.s32.totalorder %s38_s14, %s38_s14 }
   0xd   :  { %p1474_p3 = scmp.ne.s32.totalorder %s38_s14, %s1473_s24  ;;  %p1479_p5 = scmp.lt.s32.totalorder %s1473_s24, %s1473_s24 }
   0xf   :  { %p1480_p6 = por %p1479_p5, %p1478_p4 }
  0x11   :  { %p1481_p7 = pnand %p1480_p6, %p1474_p3 }
  0x13   :  { %1484 = shalt.err (!%p1481_p7)
}
  0x14   :  { %s1629_s25 = smov 64   ;;  %s1630_s26 = smov 4  }
  0x15   :  { %43 = dma.hbm_to_vmem [thread:$0]  %s1994_s1, 128, %s38_s14, [#allocation8], %s1629_s25, %s1629_s25, %s1630_s26  }
  0x16   :  { %s1485_s11 = scalar_lea.hbm %s1997_s4, 1536 }
  0x17   :  { %p1486_p8 = scmp.ne.s32.totalorder %s1997_s4, %s1485_s11  ;;  %p1489_p9 = scmp.lt.u32.totalorder %s1485_s11, %s1997_s4 }
  0x19   :  { %p1491_p10 = pnand %p1489_p9, %p1486_p8 }
  0x1b   :  { %1494 = shalt.err (!%p1491_p10)
}
  0x1c   :  { %s1495_s18 = scalar_lea.vmem %s1701_s16, 1536  ;;  %p1500_p12 = scmp.lt.s32.totalorder %s1701_s16, %s1701_s16 }
  0x1d   :  { %p1496_p11 = scmp.ne.s32.totalorder %s1701_s16, %s1495_s18  ;;  %p1501_p13 = scmp.lt.s32.totalorder %s1495_s18, %s1495_s18 }
  0x1f   :  { %p1502_p0 = por %p1501_p13, %p1500_p12 }
  0x21   :  { %p1503_p1 = pnand %p1502_p0, %p1496_p11 }
  0x23   :  { %1506 = shalt.err (!%p1503_p1)
}
  0x24   :  { %s1631_s1 = smov 192   ;;  %s1632_s14 = smov 12  }
  0x25   :  { %69 = dma.hbm_to_vmem [thread:$0]  %s1997_s4, 1536, %s1701_s16, [#allocation11], %s1631_s1, %s1631_s1, %s1632_s14  }
  0x26   :  { %s1633_s21 = smov [#allocation4]   ;;  %s1634_s23 = smov [#allocation9]  }
  0x27   :  { %s25_s22 = sshll.u32 %s1633_s21, 4  ;;  %s49_s24 = sshll.u32 %s1634_s23, 4  ;;  %s26_s22 = int_to_ptr.vmem [resolvable:$true] %s25_s22  ;;  %s1738_s24 = int_to_ptr.vmem [resolvable:$true] %s49_s24 }
  0x28   :  { %s1507_s29 = scalar_lea.hbm %s1993_s0, 256 }
  0x29   :  { %p1508_p2 = scmp.ne.s32.totalorder %s1993_s0, %s1507_s29  ;;  %p1511_p3 = scmp.lt.u32.totalorder %s1507_s29, %s1993_s0 }
  0x2b   :  { %p1513_p4 = pnand %p1511_p3, %p1508_p2 }
  0x2d   :  { %1516 = shalt.err (!%p1513_p4)
}
  0x2e   :  { %s1517_s4 = scalar_lea.vmem %s26_s22, 256  ;;  %p1522_p6 = scmp.lt.s32.totalorder %s26_s22, %s26_s22 }
  0x2f   :  { %p1518_p5 = scmp.ne.s32.totalorder %s26_s22, %s1517_s4  ;;  %p1523_p7 = scmp.lt.s32.totalorder %s1517_s4, %s1517_s4 }
  0x31   :  { %p1524_p8 = por %p1523_p7, %p1522_p6 }
  0x33   :  { %p1525_p9 = pnand %p1524_p8, %p1518_p5 }
  0x35   :  { %1528 = shalt.err (!%p1525_p9)
}
  0x36   :  { %31 = dma.hbm_to_vmem [thread:$0]  %s1993_s0, 256, %s26_s22, [#allocation5], %s1629_s25, %s1629_s25, %s1630_s26  }
  0x37   :  { %s1529_s19 = scalar_lea.hbm %s1995_s2, 384 }
  0x38   :  { %p1530_p10 = scmp.ne.s32.totalorder %s1995_s2, %s1529_s19  ;;  %p1533_p11 = scmp.lt.u32.totalorder %s1529_s19, %s1995_s2 }
  0x3a   :  { %p1535_p12 = pnand %p1533_p11, %p1530_p10 }
  0x3c   :  { %1538 = shalt.err (!%p1535_p12)
}
  0x3d   :  { %s1539_s28 = scalar_lea.vmem %s1738_s24, 384  ;;  %p1544_p0 = scmp.lt.s32.totalorder %s1738_s24, %s1738_s24 }
  0x3e   :  { %p1540_p13 = scmp.ne.s32.totalorder %s1738_s24, %s1539_s28  ;;  %p1545_p1 = scmp.lt.s32.totalorder %s1539_s28, %s1539_s28 }
  0x40   :  { %p1546_p2 = por %p1545_p1, %p1544_p0 }
  0x42   :  { %p1547_p3 = pnand %p1546_p2, %p1540_p13 }
  0x44   :  { %1550 = shalt.err (!%p1547_p3)
}
  0x45   :  { %s1635_s0 = smov 128   ;;  %s1636_s25 = smov 8  }
  0x46   :  { %55 = dma.hbm_to_vmem [thread:$0]  %s1995_s2, 384, %s1738_s24, [#allocation8], %s1635_s0, %s1635_s0, %s1636_s25  }
  0x47   :  { %s1637_s29 = smov [#allocation12]   ;;  %s1638_s11 = smov [#allocation13]  }
  0x48   :  { %s77_s30 = sshll.u32 %s1637_s29, 4  ;;  %s91_s12 = sshll.u32 %s1638_s11, 4  ;;  %s78_s30 = int_to_ptr.vmem [resolvable:$true] %s77_s30  ;;  %s1775_s12 = int_to_ptr.vmem [resolvable:$true] %s91_s12 }
  0x49   :  { %s1551_s16 = scalar_lea.hbm %s1999_s6, 3072 }
  0x4a   :  { %p1552_p4 = scmp.ne.s32.totalorder %s1999_s6, %s1551_s16  ;;  %p1555_p5 = scmp.lt.u32.totalorder %s1551_s16, %s1999_s6 }
  0x4c   :  { %p1557_p6 = pnand %p1555_p5, %p1552_p4 }
  0x4e   :  { %1560 = shalt.err (!%p1557_p6)
}
  0x4f   :  { %s1561_s2 = scalar_lea.vmem %s78_s30, 3072  ;;  %p1566_p8 = scmp.lt.s32.totalorder %s78_s30, %s78_s30 }
  0x50   :  { %p1562_p7 = scmp.ne.s32.totalorder %s78_s30, %s1561_s2  ;;  %p1567_p9 = scmp.lt.s32.totalorder %s1561_s2, %s1561_s2 }
  0x52   :  { %p1568_p10 = por %p1567_p9, %p1566_p8 }
  0x54   :  { %p1569_p11 = pnand %p1568_p10, %p1562_p7 }
  0x56   :  { %1572 = shalt.err (!%p1569_p11)
}
  0x57   :  { %83 = dma.hbm_to_vmem [thread:$0]  %s1999_s6, 3072, %s78_s30, [#allocation11], %s1631_s1, %s1631_s1, %s1632_s14  }
  0x58   :  { %s1573_s27 = scalar_lea.hbm %s2001_s8, 2048 }
  0x59   :  { %p1574_p12 = scmp.ne.s32.totalorder %s2001_s8, %s1573_s27  ;;  %p1577_p13 = scmp.lt.u32.totalorder %s1573_s27, %s2001_s8 }
  0x5b   :  { %p1579_p0 = pnand %p1577_p13, %p1574_p12 }
  0x5d   :  { %1582 = shalt.err (!%p1579_p0)
}
  0x5e   :  { %s1583_s11 = scalar_lea.vmem %s1775_s12, 2048  ;;  %p1588_p2 = scmp.lt.s32.totalorder %s1775_s12, %s1775_s12 }
  0x5f   :  { %p1584_p1 = scmp.ne.s32.totalorder %s1775_s12, %s1583_s11  ;;  %p1589_p3 = scmp.lt.s32.totalorder %s1583_s11, %s1583_s11 }
  0x61   :  { %p1590_p4 = por %p1589_p3, %p1588_p2 }
  0x63   :  { %p1591_p5 = pnand %p1590_p4, %p1584_p1 }
  0x65   :  { %1594 = shalt.err (!%p1591_p5)
}
  0x66   :  { %97 = dma.hbm_to_vmem [thread:$0]  %s2001_s8, 2048, %s1775_s12, [#allocation14], %s1635_s0, %s1635_s0, %s1636_s25  }
  0x67   :  { %1617 = dma.done.wait [#allocation5], 256  }
  0x68   :  { %1618 = vsyncadd [#allocation5], 4294967040 }
  0x69   :  { %1619 = dma.done.wait [#allocation8], 512  }
  0x6a   :  { %1620 = vsyncadd [#allocation8], 4294966784 }
  0x6b   :  { %1621 = dma.done.wait [#allocation11], 4608  }
  0x6c   :  { %1622 = vsyncadd [#allocation11], 4294962688 }
  0x6d   :  { %1623 = dma.done.wait [#allocation14], 2048  }
  0x6e   :  { %1624 = vsyncadd [#allocation14], 4294965248  ;;  %vm123_vm0 = vcmask 125952   ;;  %v119_v0 = vld [vmem:[#allocation4] sm:$0xf]  ;;  %v317_v58 = vld [vmem:[#allocation9] sm:$0xff] }
  0x6f   :  { %v121_v1 = vld [vmem:[#allocation4 + $0x8] sm:$0xf]  ;;  %v120_v2 = vld [vmem:[#allocation4 + $0x4] sm:$0xf]  ;;  %v124_v3 = vsel %vm123_vm0, %v119_v0, 0.0  ;;  %v1639_v60 = vmov 0.0|0.0  }
  0x70   :  { %v130_v4 = vsel %vm123_vm0, %v121_v1, 0.0  ;;  %v122_v5 = vld [vmem:[#allocation4 + $0xc] sm:$0xf]  ;;  %125 = vadd.xlane.f32.xlu0 %v124_v3  ;;  %v127_v6 = vsel %vm123_vm0, %v120_v2, 0.0  ;;  %v177_v41 = vld [vmem:[#allocation7] sm:$0xf]  ;;  %1337 = vmatprep.subr.bf16.mxu1 %v1639_v60 }
  0x71   :  { %131 = vadd.xlane.f32.xlu1 %v130_v4  ;;  %v133_v7 = vsel %vm123_vm0, %v122_v5, 0.0  ;;  %v178_v48 = vld [vmem:[#allocation7 + $0x4] sm:$0xf]  ;;  %v318_v59 = vld [vmem:[#allocation9 + $0x8] sm:$0xff]  ;;  %vm1640_vm1 = vmmov 0   ;;  %v1641_v62 = vmov 0.0  }
  0x72   :  { %v1338_v61 = vpack.c.bf16 %v318_v59, %v317_v58  ;;  %1247 = vmatprep.mubr.msk.f32.mxu1 %vm1640_vm1, %v1641_v62  ;;  %v319_v63 = vld [vmem:[#allocation9 + $0x10] sm:$0xff]  ;;  %v1828_v3 = vld [vmem:[#allocation12 + $0x4] ss:$12 sps:$4 sm:$0xff]   ;;  %vm239_vm6 = vcmask 1041409   ;;  %vm307_vm7 = vcmask 31744   ;;  %vm309_vm8 = vcmask 64512  }
  0x73   :  { %v1388_v4 = vld [vmem:[#allocation10 + $0x18] ss:$12 sps:$4 sm:$0xff]   ;;  %vm311_vm9 = vcmask 97280   ;;  %vm313_vm10 = vcmask 130048   ;;  %vm315_vm11 = vcmask 162816   ;;  %vm327_vm12 = vcmask 195584  }
  0x74   :  { %128 = vadd.xlane.f32.xlu0 %v127_v6  ;;  %1339 = vmatpush3.bf16.msra.mxu1 %v1338_v61  ;;  %v1394_v6 = vld [vmem:[#allocation10 + $0x30] ss:$12 sps:$4 sm:$0xff]   ;;  %vm499_vm13 = vcmask 523264  }
  0x75   :  { %134 = vadd.xlane.f32.xlu1 %v133_v7  ;;  %1245 = vmatprep.subr.mxu1 %v1641_v62 }
  0x78   :  { %1246 = vmatpush3.msra.mxu1 %v319_v63 }
  0x79   :  { %767 = vmatprep.subr.bf16.mxu1 %v1828_v3 }
  0xfd   :  { %v126_v8 = vpop.xlane.xlu0 %125 }
  0xfe   :  { %v132_v9 = vpop.xlane.xlu1 %131  ;;  %v137_v10 = vmul.f32 0.0625, %v126_v8 }
  0xff   :  { %v139_v11 = vmul.f32 0.0625, %v132_v9 }
 0x100   :  { %v141_v12 = vsub.f32 %v119_v0, %v137_v10  ;;  %v1383_v0 = vld [vmem:[#allocation10 + $0x4] ss:$12 sps:$4 sm:$0xff]  }
 0x101   :  { %v143_v13 = vsub.f32 %v121_v1, %v139_v11  ;;  %v129_v14 = vpop.xlane.xlu0 %128  ;;  %v1385_v1 = vld [vmem:[#allocation10] ss:$12 sps:$4 sm:$0xff]   ;;  %503 = vmatprep.subr.bf16.mxu0 %v1383_v0 }
 0x102   :  { %v135_v15 = vpop.xlane.xlu1 %134  ;;  %v138_v16 = vmul.f32 0.0625, %v129_v14  ;;  %v145_v18 = vmul.f32 %v141_v12, %v141_v12  ;;  %504 = vmatpush1.bf16.msra.mxu0 %v1385_v1 }
 0x103   :  { %v140_v17 = vmul.f32 0.0625, %v135_v15  ;;  %v147_v19 = vmul.f32 %v143_v13, %v143_v13 }
 0x104   :  { %v142_v20 = vsub.f32 %v120_v2, %v138_v16  ;;  %v149_v22 = vsel %vm123_vm0, %v145_v18, 0.0  ;;  %v1386_v2 = vld [vmem:[#allocation10 + $0x1c] ss:$12 sps:$4 sm:$0xff]   ;;  %v229_v18 = vlaneseq }
 0x105   :  { %v144_v21 = vsub.f32 %v122_v5, %v140_v17  ;;  %150 = vadd.xlane.f32.xlu0 %v149_v22  ;;  %v155_v23 = vsel %vm123_vm0, %v147_v19, 0.0  ;;  %505 = vmatprep.subr.bf16.mxu0 %v1386_v2  ;;  %v1392_v5 = vld [vmem:[#allocation10 + $0x34] ss:$12 sps:$4 sm:$0xff]  }
 0x106   :  { %v146_v24 = vmul.f32 %v142_v20, %v142_v20  ;;  %506 = vmatpush1.bf16.msra.mxu0 %v1388_v4  ;;  %v1847_v22 = vand.u32 127, %v229_v18 }
 0x107   :  { %v148_v25 = vmul.f32 %v144_v21, %v144_v21  ;;  %507 = vmatprep.subr.bf16.mxu0 %v1392_v5 }
 0x108   :  { %v152_v26 = vsel %vm123_vm0, %v146_v24, 0.0  ;;  %v283_v24 = vadd.s32 4294967280, %v1847_v22  ;;  %vm1101_vm14 = vcmp.ge.s32.totalorder %v1847_v22, 4  ;;  %vm1102_vm15 = vcmp.lt.s32.totalorder %v1847_v22, 8 }
 0x109   :  { %156 = vadd.xlane.f32.xlu0 %v155_v23  ;;  %153 = vadd.xlane.f32.xlu1 %v152_v26  ;;  %v158_v27 = vsel %vm123_vm0, %v148_v25, 0.0  ;;  %v1849_v23 = vshrl.u32 %v229_v18, 7  ;;  %v244_v25 = vadd.s32 4294967292, %v1847_v22 }
 0x10a   :  { %508 = vmatpush1.bf16.msra.mxu0 %v1394_v6 }
 0x10d   :  { %159 = vadd.xlane.f32.xlu1 %v158_v27  ;;  %v257_v27 = vadd.s32 4294967288, %v1847_v22 }
 0x192   :  { %v151_v28 = vpop.xlane.xlu0 %150 }
 0x193   :  { %v161_v29 = vmul.f32 0.0625, %v151_v28  ;;  %v270_v28 = vadd.s32 4294967284, %v1847_v22 }
 0x195   :  { %v165_v30 = vadd.f32 1e-05, %v161_v29  ;;  %v286_v29 = vsub.s32 %v283_v24, %v1849_v23  ;;  %v1642_v24 = vmov 0  }
 0x196   :  { %v154_v31 = vpop.xlane.xlu1 %153  ;;  %v157_v32 = vpop.xlane.xlu0 %156  ;;  %535 = vmatprep.mubr.bf16.mxu0 %v1642_v24 }
 0x197   :  { %1431 = vrsqrt.f32 %v165_v30  ;;  %v162_v33 = vmul.f32 0.0625, %v154_v31  ;;  %v163_v34 = vmul.f32 0.0625, %v157_v32 }
 0x199   :  { %v166_v35 = vadd.f32 1e-05, %v162_v33  ;;  %v167_v36 = vadd.f32 1e-05, %v163_v34  ;;  %v296_v33 = vadd.s32 4294967276, %v1847_v22 }
 0x19a   :  { %v160_v37 = vpop.xlane.xlu1 %159 }
 0x19b   :  { %1433 = vrsqrt.f32 %v166_v35  ;;  %v164_v38 = vmul.f32 0.0625, %v160_v37  ;;  %v233_v35 = vsub.s32 %v1847_v22, %v1849_v23 }
 0x19c   :  { %1435 = vrsqrt.f32 %v167_v36  ;;  %v247_v36 = vsub.s32 %v244_v25, %v1849_v23  ;;  %v1405_v25 = vld [vmem:[#allocation12 + $0x48] ss:$12 sps:$4 sm:$0xff]  }
 0x19d   :  { %v168_v39 = vadd.f32 1e-05, %v164_v38 }
 0x19f   :  { %1437 = vrsqrt.f32 %v168_v39 }
 0x1a1   :  { %v1432_v40 = vpop.eup %1431 }
 0x1a2   :  { %v173_v42 = vmul.f32 %v1432_v40, %v141_v12 }
 0x1a4   :  { %v179_v43 = vmul.f32 %v177_v41, %v173_v42 }
 0x1a5   :  { %v1434_v44 = vpop.eup %1433 }
 0x1a6   :  { %v1436_v45 = vpop.eup %1435  ;;  %v183_v46 = vsel %vm123_vm0, %v179_v43, 0.0  ;;  %v174_v47 = vmul.f32 %v1434_v44, %v142_v20  ;;  %v260_v43 = vsub.s32 %v257_v27, %v1849_v23  ;;  %v273_v44 = vsub.s32 %v270_v28, %v1849_v23  ;;  %v1409_v27 = vld [vmem:[#allocation12 + $0x60] ss:$12 sps:$4 sm:$0xff]   ;;  %v1411_v28 = vld [vmem:[#allocation12 + $0x64] ss:$12 sps:$4 sm:$0xff]  }
 0x1a7   :  { %184 = vadd.xlane.f32.xlu0 %v183_v46  ;;  %v175_v49 = vmul.f32 %v1436_v45, %v143_v13 }
 0x1a8   :  { %v180_v50 = vmul.f32 %v177_v41, %v174_v47 }
 0x1a9   :  { %v1438_v51 = vpop.eup %1437  ;;  %v181_v52 = vmul.f32 %v178_v48, %v175_v49 }
 0x1aa   :  { %v186_v53 = vsel %vm123_vm0, %v180_v50, 0.0  ;;  %v176_v54 = vmul.f32 %v1438_v51, %v144_v21 }
 0x1ab   :  { %187 = vadd.xlane.f32.xlu1 %v186_v53  ;;  %v189_v55 = vsel %vm123_vm0, %v181_v52, 0.0 }
 0x1ac   :  { %190 = vadd.xlane.f32.xlu0 %v189_v55  ;;  %v182_v56 = vmul.f32 %v178_v48, %v176_v54  ;;  %v299_v54 = vsub.s32 %v296_v33, %v1849_v23  ;;  %v1420_v33 = vld [vmem:[#allocation12 + $0xa8] ss:$12 sps:$4 sm:$0xff]  }
 0x1ae   :  { %v192_v57 = vsel %vm123_vm0, %v182_v56, 0.0  ;;  %vm1960_vm0 = vmand %vm1101_vm14, %vm1102_vm15 }
 0x1af   :  { %193 = vadd.xlane.f32.xlu1 %v192_v57 }
 0x234   :  { %v185_v7 = vpop.xlane.xlu0 %184 }
 0x235   :  { %1439 = vtanh.f32 %v185_v7 }
 0x238   :  { %v188_v8 = vpop.xlane.xlu1 %187 }
 0x239   :  { %v191_v9 = vpop.xlane.xlu0 %190 }
 0x23a   :  { %1441 = vtanh.f32 %v191_v9 }
 0x23b   :  { %1443 = vtanh.f32 %v188_v8 }
 0x23c   :  { %v194_v10 = vpop.xlane.xlu1 %193 }
 0x23d   :  { %1445 = vtanh.f32 %v194_v10 }
 0x23f   :  { %v1831_v11 = vpop.eup %1439 }
 0x240   :  { %v199_v14 = vmul.f32 %v1831_v11, %v1831_v11  ;;  %v287_v6 = vrot.slane %v1831_v11, %v286_v29 }
 0x244   :  { %v1833_v12 = vpop.eup %1441 }
 0x245   :  { %v1835_v13 = vpop.eup %1443  ;;  %v201_v15 = vmul.f32 %v1833_v12, %v1833_v12  ;;  %v300_v8 = vrot.slane %v1833_v12, %v299_v54 }
 0x246   :  { %v200_v19 = vmul.f32 %v1835_v13, %v1835_v13  ;;  %v291_v59 = vrot.slane %v1835_v13, %v286_v29  ;;  %v1413_v29 = vld [vmem:[#allocation12 + $0x78] ss:$12 sps:$4 sm:$0xff]  }
 0x247   :  { %v1841_v16 = vpop.eup %1445  ;;  %v203_v17 = vadd.f32 %v201_v15, %v199_v14  ;;  %v1389_v14 = vld [vmem:[#allocation12] ss:$12 sps:$4 sm:$0xff]  }
 0x248   :  { %v202_v20 = vmul.f32 %v1841_v16, %v1841_v16  ;;  %v304_v2 = vrot.slane %v1841_v16, %v299_v54  ;;  %v292_v10 = vsel %vm239_vm6, %v291_v59, %v287_v6 }
 0x249   :  { %1447 = vrsqrt.f32 %v203_v17  ;;  %vm207_vm2 = vcmp.eq.f32.partialorder %v203_v17, inf  ;;  %v210_v34 = vand.u32 2147483648, %v203_v17  ;;  %vm209_vm3 = vcmp.eq.f32.partialorder %v203_v17, 0.0 }
 0x24a   :  { %v204_v21 = vadd.f32 %v202_v20, %v200_v19  ;;  %v219_v39 = vmul.f32 %v1831_v11, %v203_v17  ;;  %v221_v40 = vmul.f32 %v1833_v12, %v203_v17  ;;  %v305_v15 = vsel %vm239_vm6, %v304_v2, %v300_v8  ;;  %v1395_v19 = vld [vmem:[#allocation12 + $0x18] ss:$12 sps:$4 sm:$0xff]   ;;  %v1400_v20 = vld [vmem:[#allocation10 + $0x48] ss:$12 sps:$4 sm:$0xff]  }
 0x24c   :  { %1449 = vrsqrt.f32 %v204_v21  ;;  %v220_v31 = vmul.f32 %v1835_v13, %v204_v21  ;;  %v222_v32 = vmul.f32 %v1841_v16, %v204_v21  ;;  %vm214_vm4 = vcmp.eq.f32.partialorder %v204_v21, inf }
 0x24d   :  { %v217_v45 = vand.u32 2147483648, %v204_v21  ;;  %vm216_vm5 = vcmp.eq.f32.partialorder %v204_v21, 0.0  ;;  %v234_v52 = vrot.slane %v219_v39, %v233_v35  ;;  %v248_v53 = vrot.slane %v221_v40, %v247_v36  ;;  %v1408_v40 = vld [vmem:[#allocation10 + $0x20] ss:$12 sps:$4 sm:$0xff]  }
 0x24e   :  { %v238_v46 = vrot.slane %v220_v31, %v233_v35  ;;  %v252_v47 = vrot.slane %v222_v32, %v247_v36  ;;  %v1417_v31 = vld [vmem:[#allocation12 + $0x90] ss:$12 sps:$4 sm:$0xff]   ;;  %v1419_v32 = vld [vmem:[#allocation12 + $0x94] ss:$12 sps:$4 sm:$0xff]  }
 0x250   :  { %v240_v57 = vsel %vm239_vm6, %v238_v46, %v234_v52  ;;  %v253_v58 = vsel %vm239_vm6, %v252_v47, %v248_v53  ;;  %v1426_v46 = vld [vmem:[#allocation12 + $0x50] ss:$12 sps:$4 sm:$0xff]   ;;  %v1427_v47 = vld [vmem:[#allocation12 + $0x68] ss:$12 sps:$4 sm:$0xff]  }
 0x251   :  { %v308_v7 = vsel %vm307_vm7, %v240_v57, %v253_v58  ;;  %v418_v57 = vld [vmem:[%s1998_s5] sm:$0x7]  ;;  %v426_v58 = vsub.s32 1, %v1849_v23 }
 0x253   :  { %v1448_v26 = vpop.eup %1447 }
 0x254   :  { %v206_v30 = vmul.f32 %v1448_v26, %v203_v17  ;;  %v1407_v26 = vld [vmem:[#allocation12 + $0x4c] ss:$12 sps:$4 sm:$0xff]  }
 0x256   :  { %v1450_v37 = vpop.eup %1449  ;;  %v208_v38 = vsel %vm207_vm2, %v203_v17, %v206_v30  ;;  %v1397_v17 = vld [vmem:[#allocation12 + $0x1c] ss:$12 sps:$4 sm:$0xff]   ;;  %vm1105_vm2 = vcmask 1041408  }
 0x257   :  { %v211_v41 = vsel %vm209_vm3, %v210_v34, %v208_v38  ;;  %v213_v42 = vmul.f32 %v1450_v37, %v204_v21  ;;  %v1415_v30 = vld [vmem:[#allocation12 + $0x7c] ss:$12 sps:$4 sm:$0xff]   ;;  %v1422_v34 = vld [vmem:[#allocation12 + $0xac] ss:$12 sps:$4 sm:$0xff]  }
 0x258   :  { %v223_v49 = vmul.f32 %v1831_v11, %v211_v41  ;;  %v225_v50 = vmul.f32 %v1833_v12, %v211_v41  ;;  %v1398_v11 = vld [vmem:[#allocation10 + $0x4c] ss:$12 sps:$4 sm:$0xff]   ;;  %v1403_v12 = vld [vmem:[#allocation12 + $0x34] ss:$12 sps:$4 sm:$0xff]  }
 0x259   :  { %v215_v48 = vsel %vm214_vm4, %v204_v21, %v213_v42  ;;  %509 = vmatprep.subr.bf16.mxu0 %v1398_v11  ;;  %v1401_v21 = vld [vmem:[#allocation12 + $0x30] ss:$12 sps:$4 sm:$0xff]   ;;  %v1404_v38 = vld [vmem:[#allocation10 + $0x8] ss:$12 sps:$4 sm:$0xff]   ;;  %v1412_v41 = vld [vmem:[#allocation10 + $0x38] ss:$12 sps:$4 sm:$0xff]  }
 0x25a   :  { %v218_v51 = vsel %vm216_vm5, %v217_v45, %v215_v48  ;;  %v261_v61 = vrot.slane %v223_v49, %v260_v43  ;;  %v274_v0 = vrot.slane %v225_v50, %v273_v44  ;;  %510 = vmatpush1.bf16.msra.mxu0 %v1400_v20  ;;  %v1416_v42 = vld [vmem:[#allocation10 + $0x50] ss:$12 sps:$4 sm:$0xff]   ;;  %v1425_v45 = vld [vmem:[#allocation12 + $0x38] ss:$12 sps:$4 sm:$0xff]   ;;  %v1428_v48 = vld [vmem:[#allocation12 + $0x80] ss:$12 sps:$4 sm:$0xff]  }
 0x25b   :  { %v224_v55 = vmul.f32 %v1835_v13, %v218_v51  ;;  %v226_v56 = vmul.f32 %v1841_v16, %v218_v51  ;;  %1250 = vmatprep.subr.bf16.mxu0 %v1641_v62  ;;  %v1429_v49 = vld [vmem:[#allocation12 + $0x98] ss:$12 sps:$4 sm:$0xff]   ;;  %v1430_v50 = vld [vmem:[#allocation12 + $0xb0] ss:$12 sps:$4 sm:$0xff]  }
 0x25d   :  { %v265_v63 = vrot.slane %v224_v55, %v260_v43  ;;  %v278_v1 = vrot.slane %v226_v56, %v273_v44  ;;  %v1423_v43 = vld [vmem:[#allocation12 + $0x8] ss:$12 sps:$4 sm:$0xff]   ;;  %v1424_v44 = vld [vmem:[#allocation12 + $0x20] ss:$12 sps:$4 sm:$0xff]   ;;  %v422_v56 = vsub.s32 0, %v1849_v23 }
 0x25f   :  { %v266_v4 = vsel %vm239_vm6, %v265_v63, %v261_v61  ;;  %v279_v5 = vsel %vm239_vm6, %v278_v1, %v274_v0  ;;  %v423_v59 = vrot.slane %v418_v57, %v422_v56  ;;  %v427_v61 = vrot.slane %v418_v57, %v426_v58 }
 0x260   :  { %v310_v9 = vsel %vm309_vm8, %v308_v7, %v266_v4  ;;  %v1643_v7 = vmov 1983009808  }
 0x261   :  { %v312_v13 = vsel %vm311_vm9, %v310_v9, %v279_v5  ;;  %v589_v8 = vunpack.c.l.s4 %v1643_v7  ;;  %v430_v9 = vsub.s32 2, %v1849_v23 }
 0x262   :  { %v314_v16 = vsel %vm313_vm10, %v312_v13, %v292_v10  ;;  %v1644_v13 = vmov 1966171168  }
 0x263   :  { %v316_v18 = vsel %vm315_vm11, %v314_v16, %v305_v15  ;;  %v590_v10 = vunpack.c.0.s8 %v589_v8  ;;  %v431_v15 = vrot.slane %v418_v57, %v430_v9  ;;  %v1013_v57 = vld [vmem:[#allocation13 + $0x30] sm:$0xff]  ;;  %v1022_v8 = vld [vmem:[#allocation13 + $0x78] sm:$0xff] }
 0x264   :  { %1248 = vmatmul.mubr.msk.f32.vlgmr.msra.gmra.mrb[0].mxu1 %vm327_vm12, %v316_v18 }
 0x265   :  { %768 = vmatpush1.bf16.msra.mxu1 %v1389_v14  ;;  %799 = vmatprep.mubr.bf16.mxu1 %v1642_v24  ;;  %v593_v16 = vsub.s32 %v590_v10, %v1849_v23 }
 0x266   :  { %769 = vmatprep.subr.bf16.mxu1 %v1397_v17 }
 0x269   :  { %770 = vmatpush1.bf16.msra.mxu1 %v1395_v19 }
 0x26a   :  { %771 = vmatprep.subr.bf16.mxu1 %v1403_v12 }
 0x26d   :  { %772 = vmatpush1.bf16.msra.mxu1 %v1401_v21 }
 0x26e   :  { %773 = vmatprep.subr.bf16.mxu1 %v1407_v26 }
 0x271   :  { %774 = vmatpush1.bf16.msra.mxu1 %v1405_v25 }
 0x272   :  { %775 = vmatprep.subr.bf16.mxu1 %v1411_v28 }
 0x275   :  { %776 = vmatpush1.bf16.msra.mxu1 %v1409_v27 }
 0x276   :  { %777 = vmatprep.subr.bf16.mxu1 %v1415_v30 }
 0x279   :  { %778 = vmatpush1.bf16.msra.mxu1 %v1413_v29 }
 0x27a   :  { %779 = vmatprep.subr.bf16.mxu1 %v1419_v32 }
 0x27d   :  { %780 = vmatpush1.bf16.msra.mxu1 %v1417_v31 }
 0x27e   :  { %781 = vmatprep.subr.bf16.mxu1 %v1422_v34 }
 0x281   :  { %782 = vmatpush1.bf16.msra.mxu1 %v1420_v33 }
 0x282   :  { %888 = vmatprep.subr.bf16.mxu1 %v1828_v3  ;;  %v1156_v3 = vld [vmem:[%s1996_s3] ss:$0 sm:$0xff] }
 0x284   :  { %800 = vmatmul.mubr.bf16.vlgmr.msra.gmra.mrb[4].mxu1 %v1642_v24 }
 0x285   :  { %889 = vmatpush1.bf16.msra.mxu1 %v1389_v14  ;;  %920 = vmatprep.mubr.bf16.mxu1 %v1642_v24  ;;  %v852_v14 = vunpack.c.l.s4 %v1644_v13 }
 0x286   :  { %890 = vmatprep.subr.bf16.mxu1 %v1397_v17 }
 0x287   :  { %v853_v17 = vunpack.c.0.s8 %v852_v14 }
 0x289   :  { %891 = vmatpush1.bf16.msra.mxu1 %v1395_v19 }
 0x28a   :  { %892 = vmatprep.subr.bf16.mxu1 %v1403_v12 }
 0x28d   :  { %893 = vmatpush1.bf16.msra.mxu1 %v1401_v21 }
 0x28e   :  { %894 = vmatprep.subr.bf16.mxu1 %v1407_v26 }
 0x291   :  { %895 = vmatpush1.bf16.msra.mxu1 %v1405_v25  ;;  %v1927_v25 = vsub.s32 %v853_v17, %v1849_v23 }
 0x292   :  { %896 = vmatprep.subr.bf16.mxu1 %v1411_v28 }
 0x295   :  { %897 = vmatpush1.bf16.msra.mxu1 %v1409_v27 }
 0x296   :  { %898 = vmatprep.subr.bf16.mxu1 %v1415_v30 }
 0x299   :  { %899 = vmatpush1.bf16.msra.mxu1 %v1413_v29 }
 0x29a   :  { %900 = vmatprep.subr.bf16.mxu1 %v1419_v32 }
 0x29d   :  { %901 = vmatpush1.bf16.msra.mxu1 %v1417_v31 }
 0x29e   :  { %902 = vmatprep.subr.bf16.mxu1 %v1422_v34 }
 0x2a1   :  { %903 = vmatpush1.bf16.msra.mxu1 %v1420_v33  ;;  %v1934_v33 = vld [vmem:[%s2000_s7] sm:$0x1] }
 0x2a2   :  { %1340 = vmatprep.subr.bf16.mxu1 %v1639_v60 }
 0x337   :  { %v397_v35 = vpop.f32.mrb[0].mxu1 }
 0x338   :  { %v398_v36 = vadd.f32 %v1156_v3, %v397_v35  ;;  %v1249_v37 = vpop.f32.mrb[1].mxu1 }
 0x33a   :  { %v401_v39 = vpack.c.bf16 %v398_v36, %v398_v36 }
 0x33c   :  { %1170 = vmatmul.mubr.msk.bf16.vlgmr.msra.gmra.mrb[0].mxu0 %vm499_vm13, %v401_v39 }
 0x33d   :  { %1251 = vmatpush3.bf16.msra.mxu0 %v1404_v38  ;;  %1258 = vmatprep.mubr.msk.bf16.mxu0 %vm1640_vm1, %v1641_v62 }
 0x33e   :  { %1252 = vmatprep.subr.bf16.mxu0 %v1641_v62 }
 0x341   :  { %1253 = vmatpush3.bf16.msra.mxu0 %v1408_v40 }
 0x342   :  { %1254 = vmatprep.subr.bf16.mxu0 %v1641_v62 }
 0x345   :  { %1255 = vmatpush3.bf16.msra.mxu0 %v1412_v41 }
 0x346   :  { %1256 = vmatprep.subr.bf16.mxu0 %v1641_v62 }
 0x349   :  { %1257 = vmatpush3.bf16.msra.mxu0 %v1416_v42 }
 0x34a   :  { %1262 = vmatprep.subr.bf16.mxu0 %v1641_v62 }
 0x34c   :  { %1259 = vmatmul.mubr.msk.bf16.vlgmr.msra.gmra.mrb[4].mxu0 %vm499_vm13, %v401_v39 }
 0x34d   :  { %1263 = vmatpush3.bf16.msra.mxu0 %v1423_v43  ;;  %1278 = vmatprep.mubr.msk.bf16.mxu0 %vm1640_vm1, %v1641_v62 }
 0x34e   :  { %1264 = vmatprep.subr.bf16.mxu0 %v1641_v62 }
 0x351   :  { %1265 = vmatpush3.bf16.msra.mxu0 %v1424_v44 }
 0x352   :  { %1266 = vmatprep.subr.bf16.mxu0 %v1641_v62 }
 0x355   :  { %1267 = vmatpush3.bf16.msra.mxu0 %v1425_v45 }
 0x356   :  { %1268 = vmatprep.subr.bf16.mxu0 %v1641_v62 }
 0x357   :  { %v801_v51 = vpop.f32.mrb[4].mxu1 }
 0x358   :  { %v803_v52 = vpop.f32.mrb[5].mxu1 }
 0x359   :  { %1269 = vmatpush3.bf16.msra.mxu0 %v1426_v46  ;;  %v805_v53 = vpop.f32.mrb[6].mxu1  ;;  %v850_v55 = vcombine.low %v801_v51, %v803_v52  ;;  %v1009_v51 = vld [vmem:[#allocation13 + $0x10] sm:$0xff]  ;;  %v1010_v52 = vld [vmem:[#allocation13 + $0x18] sm:$0xff] }
 0x35a   :  { %1270 = vmatprep.subr.bf16.mxu0 %v1641_v62  ;;  %v806_v54 = vpop.f32.mrb[7].mxu1  ;;  %v1344_v53 = vpack.c.bf16 %v1010_v52, %v1009_v51 }
 0x35b   :  { %v857_v27 = vrot.slane %v850_v55, %v1927_v25  ;;  %v1011_v54 = vld [vmem:[#allocation13 + $0x20] sm:$0xff]  ;;  %v1012_v55 = vld [vmem:[#allocation13 + $0x28] sm:$0xff] }
 0x35c   :  { %v1347_v56 = vpack.c.bf16 %v1012_v55, %v1011_v54 }
 0x35d   :  { %1271 = vmatpush3.bf16.msra.mxu0 %v1427_v47  ;;  %v864_v28 = vrot.slane %v857_v27, %v1927_v25 }
 0x35e   :  { %1272 = vmatprep.subr.bf16.mxu0 %v1641_v62 }
 0x361   :  { %1273 = vmatpush3.bf16.msra.mxu0 %v1428_v48 }
 0x362   :  { %1274 = vmatprep.subr.bf16.mxu0 %v1641_v62 }
 0x365   :  { %1275 = vmatpush3.bf16.msra.mxu0 %v1429_v49 }
 0x366   :  { %1276 = vmatprep.subr.bf16.mxu0 %v1641_v62 }
 0x369   :  { %1277 = vmatpush3.bf16.msra.mxu0 %v1430_v50 }
 0x36a   :  { %1282 = vmatprep.subr.bf16.mxu0 %v1641_v62 }
 0x36c   :  { %1279 = vmatmul.mubr.bf16.vlgmr.msra.gmra.mrb[8].mxu0 %v1642_v24 }
 0x36d   :  { %1283 = vmatpush3.bf16.msra.mxu0 %v1423_v43  ;;  %1298 = vmatprep.mubr.msk.bf16.mxu0 %vm1640_vm1, %v1641_v62 }
 0x36e   :  { %1284 = vmatprep.subr.bf16.mxu0 %v1641_v62 }
 0x371   :  { %1285 = vmatpush3.bf16.msra.mxu0 %v1424_v44 }
 0x372   :  { %1286 = vmatprep.subr.bf16.mxu0 %v1641_v62 }
 0x375   :  { %1287 = vmatpush3.bf16.msra.mxu0 %v1425_v45 }
 0x376   :  { %1288 = vmatprep.subr.bf16.mxu0 %v1641_v62 }
 0x379   :  { %1289 = vmatpush3.bf16.msra.mxu0 %v1426_v46 }
 0x37a   :  { %1290 = vmatprep.subr.bf16.mxu0 %v1641_v62 }
 0x37d   :  { %1291 = vmatpush3.bf16.msra.mxu0 %v1427_v47 }
 0x37e   :  { %1292 = vmatprep.subr.bf16.mxu0 %v1641_v62 }
 0x381   :  { %1293 = vmatpush3.bf16.msra.mxu0 %v1428_v48  ;;  %v1007_v48 = vld [vmem:[#allocation13] sm:$0xff] }
 0x382   :  { %1294 = vmatprep.subr.bf16.mxu0 %v1641_v62 }
 0x385   :  { %1295 = vmatpush3.bf16.msra.mxu0 %v1429_v49  ;;  %v1008_v49 = vld [vmem:[#allocation13 + $0x8] sm:$0xff] }
 0x386   :  { %1296 = vmatprep.subr.bf16.mxu0 %v1641_v62 }
 0x389   :  { %1297 = vmatpush3.bf16.msra.mxu0 %v1430_v50  ;;  %v1341_v50 = vpack.c.bf16 %v1008_v49, %v1007_v48 }
 0x40f   :  { %v537_v63 = vpop.f32.mrb[0].mxu0 }
 0x410   :  { %v538_v0 = vadd.f32 %v537_v63, %v423_v59  ;;  %v539_v1 = vpop.f32.mrb[1].mxu0  ;;  %v1015_v59 = vld [vmem:[#allocation13 + $0x40] sm:$0xff] }
 0x411   :  { %v540_v2 = vadd.f32 %v539_v1, %v427_v61  ;;  %v541_v4 = vpop.f32.mrb[2].mxu0  ;;  %v1016_v61 = vld [vmem:[#allocation13 + $0x48] sm:$0xff]  ;;  %v1018_v1 = vld [vmem:[#allocation13 + $0x58] sm:$0xff] }
 0x412   :  { %v542_v5 = vpop.f32.mrb[3].mxu0  ;;  %v1353_v63 = vpack.c.bf16 %v1016_v61, %v1015_v59  ;;  %v1019_v4 = vld [vmem:[#allocation13 + $0x60] sm:$0xff] }
 0x413   :  { %v587_v6 = vcombine.low %v538_v0, %v540_v2  ;;  %v1017_v0 = vld [vmem:[#allocation13 + $0x50] sm:$0xff]  ;;  %v1020_v5 = vld [vmem:[#allocation13 + $0x68] sm:$0xff] }
 0x414   :  { %v1356_v2 = vpack.c.bf16 %v1018_v1, %v1017_v0  ;;  %v1359_v7 = vpack.c.bf16 %v1020_v5, %v1019_v4 }
 0x415   :  { %v594_v12 = vrot.slane %v587_v6, %v593_v16  ;;  %v1021_v6 = vld [vmem:[#allocation13 + $0x70] sm:$0xff] }
 0x416   :  { %v1362_v9 = vpack.c.bf16 %v1022_v8, %v1021_v6 }
 0x41f   :  { %v578_v18 = vpop.f32.mrb[4].mxu0 }
 0x420   :  { %v579_v19 = vadd.f32 %v578_v18, %v431_v15  ;;  %v1260_v11 = vpop.f32.mrb[5].mxu0 }
 0x421   :  { %v581_v20 = vpop.f32.mrb[6].mxu0 }
 0x422   :  { %v601_v21 = vrot.slane %v579_v19, %v593_v16  ;;  %v1261_v24 = vpop.f32.mrb[7].mxu0 }
 0x424   :  { %v602_v26 = vcombine.low %v594_v12, %v601_v21 }
 0x426   :  { %604 = vst [vmem:[#allocation2] sm:$0x3f] %v602_v26 }
 0x42d   :  { %v638_v29 = vld [vmem:[#allocation2] ss:$2 sm:$0x7]  ;;  %v886_v21 = vld [vmem:[#allocation2 + $0x1] ss:$2 sm:$0x7] }
 0x42e   :  { %v866_v30 = vadd.f32 %v864_v28, %v638_v29  ;;  %v874_v39 = vrot.slane %v638_v29, 2 }
 0x430   :  { %v867_v31 = vmul.f32 0.5, %v866_v30 }
 0x432   :  { %1451 = vtanh.f32 %v867_v31  ;;  %v995_v31 = vrot.slane %v886_v21, 2 }
 0x43c   :  { %v1452_v32 = vpop.eup %1451 }
 0x43d   :  { %v869_v34 = vmul.f32 0.5, %v1452_v32 }
 0x43f   :  { %v842_v3 = vpop.f32.mrb[8].mxu0  ;;  %v870_v23 = vadd.f32 0.5, %v869_v34 }
 0x440   :  { %v871_v35 = vadd.f32 %v842_v3, %v1934_v33  ;;  %v1280_v36 = vpop.f32.mrb[9].mxu0 }
 0x441   :  { %v845_v37 = vpop.f32.mrb[10].mxu0  ;;  %v880_v44 = vrot.slane %v870_v23, 1 }
 0x442   :  { %v872_v38 = vmul.f32 %v871_v35, %v870_v23  ;;  %v1281_v40 = vpop.f32.mrb[11].mxu0 }
 0x444   :  { %v876_v41 = vadd.f32 %v874_v39, %v872_v38 }
 0x446   :  { %1453 = vtanh.f32 %v876_v41 }
 0x450   :  { %v1454_v42 = vpop.eup %1453 }
 0x451   :  { %v878_v43 = vsub.f32 0.0, %v1454_v42 }
 0x453   :  { %v882_v45 = vmul.f32 %v880_v44, %v878_v43 }
 0x455   :  { %v1937_v46 = vadd.f32 %v1454_v42, %v882_v45 }
 0x457   :  { %884 = vst [vmem:[#allocation3] sm:$0x1] %v1937_v46  ;;  %v887_v47 = vpack.c.bf16 %v1937_v46, %v1937_v46 }
 0x459   :  { %921 = vmatmul.mubr.bf16.vlgmr.msra.gmra.mrb[8].mxu1 %v887_v47  ;;  %1299 = vmatmul.mubr.bf16.vlgmr.msra.gmra.mrb[12].mxu0 %v887_v47 }
 0x45a   :  { %1334 = vmatprep.mubr.msk.f32.mxu1 %vm1640_vm1, %v1641_v62  ;;  %1342 = vmatpush3.bf16.msra.mxu1 %v1341_v50  ;;  %v1014_v62 = vld [vmem:[#allocation13 + $0x38] sm:$0xff]  ;;  %vm1100_vm1 = vcmp.lt.s32.totalorder %v1847_v22, 4 }
 0x45b   :  { %1343 = vmatprep.subr.bf16.mxu1 %v1639_v60  ;;  %v1350_v58 = vpack.c.bf16 %v1014_v62, %v1013_v57 }
 0x45e   :  { %1345 = vmatpush3.bf16.msra.mxu1 %v1344_v53 }
 0x45f   :  { %1346 = vmatprep.subr.bf16.mxu1 %v1639_v60 }
 0x462   :  { %1348 = vmatpush3.bf16.msra.mxu1 %v1347_v56 }
 0x463   :  { %1349 = vmatprep.subr.bf16.mxu1 %v1639_v60 }
 0x466   :  { %1351 = vmatpush3.bf16.msra.mxu1 %v1350_v58 }
 0x467   :  { %1352 = vmatprep.subr.bf16.mxu1 %v1639_v60 }
 0x46a   :  { %1354 = vmatpush3.bf16.msra.mxu1 %v1353_v63 }
 0x46b   :  { %1355 = vmatprep.subr.bf16.mxu1 %v1639_v60 }
 0x46e   :  { %1357 = vmatpush3.bf16.msra.mxu1 %v1356_v2 }
 0x46f   :  { %1358 = vmatprep.subr.bf16.mxu1 %v1639_v60 }
 0x472   :  { %1360 = vmatpush3.bf16.msra.mxu1 %v1359_v7 }
 0x473   :  { %1361 = vmatprep.subr.bf16.mxu1 %v1639_v60 }
 0x476   :  { %1363 = vmatpush3.bf16.msra.mxu1 %v1362_v9 }
 0x52c   :  { %v922_v10 = vpop.f32.mrb[8].mxu1  ;;  %v963_v13 = vpop.f32.mrb[12].mxu0 }
 0x52d   :  { %v924_v14 = vpop.f32.mrb[9].mxu1  ;;  %v1300_v15 = vpop.f32.mrb[13].mxu0  ;;  %v992_v28 = vadd.f32 %v963_v13, %v1934_v33  ;;  %v1196_v33 = vld [vmem:[%s2002_s9] ss:$0 sm:$0xff]  ;;  %s1645_s9 = smov [#allocation15]  }
 0x52e   :  { %v971_v16 = vcombine.low %v922_v10, %v924_v14  ;;  %v926_v17 = vpop.f32.mrb[10].mxu1  ;;  %v966_v18 = vpop.f32.mrb[14].mxu0  ;;  %s1144_s12 = sshll.u32 %s1645_s9, 4  ;;  %s1145_s12 = int_to_ptr.vmem [resolvable:$true] %s1144_s12 }
 0x52f   :  { %v927_v19 = vpop.f32.mrb[11].mxu1  ;;  %v1301_v11 = vpop.f32.mrb[15].mxu0  ;;  %s1595_s13 = scalar_lea.vmem %s1145_s12, 32  ;;  %p1600_p7 = scmp.lt.s32.totalorder %s1145_s12, %s1145_s12 }
 0x530   :  { %v978_v20 = vrot.slane %v971_v16, %v1927_v25  ;;  %p1596_p6 = scmp.ne.s32.totalorder %s1145_s12, %s1595_s13  ;;  %p1601_p8 = scmp.lt.s32.totalorder %s1595_s13, %s1595_s13 }
 0x532   :  { %v985_v12 = vrot.slane %v978_v20, %v1927_v25  ;;  %p1602_p9 = por %p1601_p8, %p1600_p7 }
 0x534   :  { %v987_v24 = vadd.f32 %v985_v12, %v886_v21  ;;  %p1603_p10 = pnand %p1602_p9, %p1596_p6 }
 0x536   :  { %v988_v26 = vmul.f32 0.5, %v987_v24 }
 0x538   :  { %1455 = vtanh.f32 %v988_v26 }
 0x542   :  { %v1456_v27 = vpop.eup %1455 }
 0x543   :  { %v990_v60 = vmul.f32 0.5, %v1456_v27 }
 0x545   :  { %v991_v29 = vadd.f32 0.5, %v990_v60 }
 0x547   :  { %v993_v30 = vmul.f32 %v992_v28, %v991_v29  ;;  %v1001_v23 = vrot.slane %v991_v29, 1 }
 0x549   :  { %v997_v32 = vadd.f32 %v995_v31, %v993_v30 }
 0x54b   :  { %1457 = vtanh.f32 %v997_v32 }
 0x555   :  { %v1458_v34 = vpop.eup %1457 }
 0x556   :  { %v999_v3 = vsub.f32 %v1937_v46, %v1458_v34 }
 0x558   :  { %v1003_v35 = vmul.f32 %v1001_v23, %v999_v3 }
 0x55a   :  { %v1004_v36 = vadd.f32 %v1458_v34, %v1003_v35 }
 0x55c   :  { %1005 = vst [vmem:[#allocation3 + $0x1] sm:$0x1] %v1004_v36 }
 0x563   :  { %v1006_v25 = vld [vmem:[#allocation3] sm:$0x3] }
 0x564   :  { %1335 = vmatmul.mubr.f32.vlgmr.msra.gmra.mrb[2].mxu1 %v1006_v25 }
 0x637   :  { %v1096_v37 = vpop.f32.mrb[2].mxu1 }
 0x638   :  { %v1097_v39 = vadd.f32 %v1196_v33, %v1096_v37  ;;  %v1336_v40 = vpop.f32.mrb[3].mxu1 }
 0x63a   :  { %v1110_v41 = vsel %vm1960_vm0, %v1097_v39, 0.0  ;;  %v1104_v42 = vsel %vm1100_vm1, %v1097_v39, 0.0 }
 0x63b   :  { %v1111_v43 = vsel %vm1105_vm2, %v1110_v41, 0.0  ;;  %v1106_v44 = vsel %vm1105_vm2, %v1104_v42, 0.0 }
 0x63c   :  { %1112 = vadd.xlane.f32.xlu1 %v1111_v43  ;;  %1107 = vadd.xlane.f32.xlu0 %v1106_v44 }
 0x6c9   :  { %v1113_v45 = vpop.xlane.xlu1 %1112  ;;  %v1108_v46 = vpop.xlane.xlu0 %1107 }
 0x6ca   :  { %v1114_v47 = vmul.f32 0.25, %v1113_v45  ;;  %v1109_v48 = vmul.f32 0.25, %v1108_v46 }
 0x6cc   :  { %v1122_v49 = vsub.f32 %v1097_v39, %v1114_v47  ;;  %v1115_v50 = vsub.f32 %v1097_v39, %v1109_v48  ;;  %v1129_v51 = vsel %vm1100_vm1, %v1109_v48, %v1114_v47 }
 0x6cd   :  { %v1135_v4 = vsub.f32 %v1097_v39, %v1129_v51 }
 0x6ce   :  { %v1123_v52 = vmul.f32 %v1122_v49, %v1122_v49  ;;  %v1116_v53 = vmul.f32 %v1115_v50, %v1115_v50 }
 0x6d0   :  { %v1124_v54 = vsel %vm1960_vm0, %v1123_v52, 0.0  ;;  %v1117_v55 = vsel %vm1100_vm1, %v1116_v53, 0.0 }
 0x6d1   :  { %v1125_v56 = vsel %vm1105_vm2, %v1124_v54, 0.0  ;;  %v1118_v57 = vsel %vm1105_vm2, %v1117_v55, 0.0 }
 0x6d2   :  { %1126 = vadd.xlane.f32.xlu1 %v1125_v56  ;;  %1119 = vadd.xlane.f32.xlu0 %v1118_v57 }
 0x75f   :  { %v1127_v62 = vpop.xlane.xlu1 %1126  ;;  %v1120_v58 = vpop.xlane.xlu0 %1119 }
 0x760   :  { %v1128_v59 = vmul.f32 0.25, %v1127_v62  ;;  %v1121_v61 = vmul.f32 0.25, %v1120_v58 }
 0x762   :  { %v1132_v63 = vadd.f32 1e-05, %v1128_v59  ;;  %v1130_v0 = vadd.f32 1e-05, %v1121_v61 }
 0x764   :  { %1459 = vrsqrt.f32 %v1132_v63 }
 0x765   :  { %1461 = vrsqrt.f32 %v1130_v0 }
 0x76e   :  { %v1460_v1 = vpop.eup %1459 }
 0x76f   :  { %v1462_v2 = vpop.eup %1461 }
 0x770   :  { %v1134_v5 = vsel %vm1100_vm1, %v1462_v2, %v1460_v1 }
 0x771   :  { %v1136_v6 = vmul.f32 %v1135_v4, %v1134_v5 }
 0x773   :  { %1137 = vst [vmem:[#allocation15] sm:$0x3] %v1136_v6 }
 0x774   :  { %1606 = shalt.err (!%p1603_p10)
}
 0x775   :  { %s1607_s15 = scalar_lea.hbm %s2003_s10, 32 }
 0x776   :  { %p1608_p11 = scmp.ne.s32.totalorder %s2003_s10, %s1607_s15  ;;  %p1611_p12 = scmp.lt.u32.totalorder %s1607_s15, %s2003_s10 }
 0x778   :  { %p1613_p13 = pnand %p1611_p12, %p1608_p11 }
 0x77a   :  { %1616 = shalt.err (!%p1613_p13)
}
 0x77b   :  { %1147 = dma.vmem_to_hbm [thread:$0]  %s1145_s12, 32, %s2003_s10, [#allocation6]  }
 0x77c   :  { %1625 = dma.done.wait [#allocation6], 32  }
 0x77d   :  { %1626 = vsyncadd [#allocation6], 4294967264 }
 0x77e   :  { %1151 = vsyncpa [#allocation5], 1 }
 0x77f   :  { %1152 = vsyncpa [#allocation8], 1 }
 0x780   :  { %1153 = vsyncpa [#allocation11], 1 }
 0x781   :  { %1154 = vsyncpa [#allocation14], 1 }
 0x782   :  { %1155 = vsyncpa [#allocation6], 1 }

</bundles_post_ra>
